<compile_context>
chip_gen: v5e
topology: v5e:2x2
jax: 0.10.0
libtpu: 0.0.40
codegen_flags: <defaults>
</compile_context>

<pallas_src>
import functools

import jax
import jax.numpy as jnp
from jax.experimental import pallas as pl
from jax.experimental.pallas import tpu as pltpu


def _round_up(x: int, m: int) -> int:
    return ((x + m - 1) // m) * m


def _patch_embed_kernel(x_ref, w_ref, b_ref, o_ref):
    """x_ref: (TM, Kp) patches; w_ref: (Kp, Np) weight; b_ref: (1, Np) f32 bias."""
    acc = jnp.dot(x_ref[...], w_ref[...], preferred_element_type=jnp.float32)
    o_ref[...] = (acc + b_ref[...]).astype(o_ref.dtype)


def _choose_tm(m: int, k_pad: int, n_pad: int, in_bytes: int, out_bytes: int,
               vmem_budget: int = 40 << 20) -> int:
    """Largest M-tile (multiple of 8, <=512) fitting a conservative VMEM budget.

    Budget accounts for: x tile + out tile double-buffered, weight and bias
    (counted at 2 buffers to be safe even though their block index is fixed).
    40 MiB keeps well under v7x's 64 MiB/TC; v5e/v6e have 128 MiB.
    """
    fixed = 2 * k_pad * n_pad * in_bytes + 2 * n_pad * 4
    per_row = 2 * k_pad * in_bytes + 2 * n_pad * out_bytes
    tm = max(8, (vmem_budget - fixed) // max(per_row, 1))
    tm = min(512, (tm // 8) * 8)
    tm = min(tm, _round_up(m, 8))
    return max(8, tm)


@functools.partial(jax.jit, static_argnums=(3,), static_argnames=("compute_dtype",))
def patch_embed(x, weight, bias, patch_size, *, compute_dtype=None):
    """
    x      : (B, C, H, W)  NCHW, like the PyTorch module
    weight : (embed_dim, C, P, P)  PyTorch Conv2d weight layout
    bias   : (embed_dim,)
    returns: (B, n_patches, embed_dim) in x.dtype
    """
    B, C, H, W = x.shape
    E = weight.shape[0]
    P = patch_size
    gh, gw = H // P, W // P
    n_patches = gh * gw

    out_dtype = x.dtype
    cdt = jnp.dtype(compute_dtype) if compute_dtype is not None else jnp.dtype(x.dtype)

    # ---- glue: patchify in plain JAX -------------------------------------
    # (B, C, gh, P, gw, P) -> (B, gh, gw, C, P, P) -> (B*n_patches, C*P*P).
    # Inner flattening order (c, ki, kj) matches the Conv2d weight layout.
    xp = x.reshape(B, C, gh, P, gw, P)
    xp = xp.transpose(0, 2, 4, 1, 3, 5)
    xp = xp.reshape(B * n_patches, C * P * P).astype(cdt)

    wm = weight.reshape(E, C * P * P).T.astype(cdt)  # (K, N)
    bm = bias.astype(jnp.float32).reshape(1, E)       # bias added in f32

    M, K = xp.shape
    N = E

    # ---- lane-dense padding (K, N -> x128) and M tiling -------------------
    K_pad = _round_up(K, 128)
    N_pad = _round_up(N, 128)

    in_bytes = cdt.itemsize
    out_bytes = jnp.dtype(out_dtype).itemsize
    TM = _choose_tm(M, K_pad, N_pad, in_bytes, out_bytes)
    M_pad = _round_up(M, TM)

    xp_p = jnp.pad(xp, ((0, M_pad - M), (0, K_pad - K)))
    wm_p = jnp.pad(wm, ((0, K_pad - K), (0, N_pad - N)))
    bm_p = jnp.pad(bm, ((0, 0), (0, N_pad - N)))

    # Scoped VMEM to cover the chosen tiles (capped at 64 MiB for v7x).
    tile_bytes = (2 * TM * K_pad * in_bytes
                  + 2 * TM * N_pad * out_bytes
                  + 2 * K_pad * N_pad * in_bytes
                  + 2 * N_pad * 4)
    vmem_limit = int(min(64 << 20, max(tile_bytes + (4 << 20), 16 << 20)))

    cost = pl.CostEstimate(
        flops=2 * M * K * N,
        transcendentals=0,
        bytes_accessed=(M * K * in_bytes + K * N * in_bytes
                        + N * 4 + M * N * out_bytes),
    )

    # ---- hot path: tiled projection matmul in Pallas ----------------------
    out = pl.pallas_call(
        _patch_embed_kernel,
        out_shape=jax.ShapeDtypeStruct((M_pad, N_pad), out_dtype),
        grid_spec=pltpu.PrefetchScalarGridSpec(
            num_scalar_prefetch=0,
            grid=(M_pad // TM,),
            in_specs=[
                pl.BlockSpec((TM, K_pad), lambda i: (i, 0)),     # x tile, pipelined
                pl.BlockSpec((K_pad, N_pad), lambda i: (0, 0)),  # weight, VMEM-resident
                pl.BlockSpec((1, N_pad), lambda i: (0, 0)),      # bias, VMEM-resident
            ],
            out_specs=pl.BlockSpec((TM, N_pad), lambda i: (i, 0)),
        ),
        compiler_params=pltpu.CompilerParams(
            dimension_semantics=("parallel",),   # shard M-tiles across v7x's 2 TCs
            vmem_limit_bytes=vmem_limit,
        ),
        cost_estimate=cost,
    )(xp_p, wm_p, bm_p)

    return out[:M, :N].reshape(B, n_patches, E)


if __name__ == "__main__":
    # Small shapes consistent with the module:
    #   img_size=16, patch_size=4, in_channels=4, embed_dim=32, batch=2
    B, C, IMG, P, E = 2, 4, 16, 4, 32
    n_patches = (IMG // P) ** 2

    key = jax.random.PRNGKey(0)
    kx, kw, kb = jax.random.split(key, 3)

    x = jax.random.normal(kx, (B, C, IMG, IMG), dtype=jnp.float32)
    # Deterministic parameter init (Conv2d weight/bias shapes from __init__).
    weight = jax.random.normal(kw, (E, C, P, P), dtype=jnp.float32) * 0.02
    bias = jax.random.normal(kb, (E,), dtype=jnp.float32) * 0.02

    # Pure-JAX reference (same patchify + einsum).
    gh = gw = IMG // P
    xr = x.reshape(B, C, gh, P, gw, P).transpose(0, 2, 4, 1, 3, 5)
    xr = xr.reshape(B, n_patches, C * P * P)
    ref = jnp.einsum("bpk,ek->bpe", xr, weight.reshape(E, -1)) + bias

    # f32 path (tight tolerance).
    out = jax.block_until_ready(patch_embed(x, weight, bias, P))
    assert out.shape == (B, n_patches, E), out.shape
    assert jnp.allclose(out, ref, atol=1e-4, rtol=1e-4)

    # bf16-MXU path (f32 accumulation), looser tolerance.
    out_bf16 = jax.block_until_ready(
        patch_embed(x, weight, bias, P, compute_dtype=jnp.bfloat16))
    assert out_bf16.shape == (B, n_patches, E), out_bf16.shape
    assert jnp.allclose(out_bf16, ref, atol=5e-2, rtol=5e-2)

    print("KERNEL_OK")
</pallas_src>

<mosaic_0001>
module attributes {stable_mosaic.version = 11 : i64} {
  func.func @_patch_embed_kernel(%arg0: i32, %arg1: memref<32x128xf32, #tpu.memory_space<vmem>>, %arg2: memref<128x128xf32, #tpu.memory_space<vmem>>, %arg3: memref<1x128xf32, #tpu.memory_space<vmem>>, %arg4: memref<32x128xf32, #tpu.memory_space<vmem>>) attributes {dimension_semantics = [#tpu.dimension_semantics<parallel>], iteration_bounds = array<i64: 1>, scalar_prefetch = 0 : i64, scratch_operands = 0 : i64, tpu.core_type = #tpu.core_type<tc>, window_params = [{transform_indices = @transform_0, window_bounds = array<i64: 32, 128>}, {pipeline_mode = #tpu.pipeline_mode<synchronous>, transform_indices = @transform_1, window_bounds = array<i64: 128, 128>}, {pipeline_mode = #tpu.pipeline_mode<synchronous>, transform_indices = @transform_2, window_bounds = array<i64: 1, 128>}, {transform_indices = @transform_3, window_bounds = array<i64: 32, 128>}]} {
    %c0 = arith.constant 0 : index
    %c0_0 = arith.constant 0 : index
    %0 = vector.load %arg1[%c0, %c0_0] : memref<32x128xf32, #tpu.memory_space<vmem>>, vector<32x128xf32>
    %c0_1 = arith.constant 0 : index
    %c0_2 = arith.constant 0 : index
    %1 = vector.load %arg2[%c0_1, %c0_2] : memref<128x128xf32, #tpu.memory_space<vmem>>, vector<128x128xf32>
    %cst = arith.constant dense<0.000000e+00> : vector<32x128xf32>
    %2 = tpu.matmul %0, %1, %cst {dimension_numbers = #tpu.dot_dimension_numbers<[1], [0], [0], [1], [0, 0, 1, 1], [], []>} : vector<32x128xf32>, vector<128x128xf32>, vector<32x128xf32> -> vector<32x128xf32>
    %c0_3 = arith.constant 0 : index
    %c0_4 = arith.constant 0 : index
    %3 = vector.load %arg3[%c0_3, %c0_4] : memref<1x128xf32, #tpu.memory_space<vmem>>, vector<1x128xf32>
    %4 = vector.broadcast %3 : vector<1x128xf32> to vector<32x128xf32>
    %5 = arith.addf %2, %4 : vector<32x128xf32>
    %c0_5 = arith.constant 0 : index
    %c0_6 = arith.constant 0 : index
    %6 = vector.load %arg4[%c0_5, %c0_6] : memref<32x128xf32, #tpu.memory_space<vmem>>, vector<32x128xf32>
    tpu.vector_store %arg4[%c0_5, %c0_6], %5 {strides = array<i32>} : memref<32x128xf32, #tpu.memory_space<vmem>>, vector<32x128xf32>,
    return
  }
  func.func @transform_0(%arg0: i32) -> (i32, i32) {
    %c0_i32 = arith.constant 0 : i32
    %c0_i32_0 = arith.constant 0 : i32
    return %arg0, %c0_i32 : i32, i32
  }
  func.func @transform_1(%arg0: i32) -> (i32, i32) {
    %c0_i32 = arith.constant 0 : i32
    %c0_i32_0 = arith.constant 0 : i32
    %c0_i32_1 = arith.constant 0 : i32
    return %c0_i32, %c0_i32_0 : i32, i32
  }
  func.func @transform_2(%arg0: i32) -> (i32, i32) {
    %c0_i32 = arith.constant 0 : i32
    %c0_i32_0 = arith.constant 0 : i32
    %c0_i32_1 = arith.constant 0 : i32
    return %c0_i32, %c0_i32_0 : i32, i32
  }
  func.func @transform_3(%arg0: i32) -> (i32, i32) {
    %c0_i32 = arith.constant 0 : i32
    %c0_i32_0 = arith.constant 0 : i32
    return %arg0, %c0_i32 : i32, i32
  }
}

</mosaic_0001>

<bundles_post_ra>
// kernel: patch_embed.1
= control target key start
LH: loop header
LB: loop body
LE: loop exit
PB: predicated region body
PF: predicated region fallthrough
CT: control target
= control target key end

     0   :  { %s257_s0 = inlined_call_operand.vmem [shape: f32[32,128], index: 0, kind: input, shape index: {}]   ;;  %s258_s1 = inlined_call_operand.vmem [shape: f32[128,128], index: 1, kind: input, shape index: {}]   ;;  %s259_s2 = inlined_call_operand.vmem [shape: f32[1,128], index: 2, kind: input, shape index: {}]   ;;  %s260_s3 = inlined_call_operand.hbm [shape: f32[32,128], index: 3, kind: output, shape index: {}]  }
   0x1   :  { %v34_v0 = vld [vmem:[%s258_s1 + $0x78] sm:$0xff]  ;;  %v33_v1 = vld [vmem:[%s258_s1 + $0x70] sm:$0xff]  ;;  %v32_v2 = vld [vmem:[%s258_s1 + $0x68] sm:$0xff] }
   0x2   :  { %91 = vmatpush.msra.mxu2 %v34_v0  ;;  %92 = vmatpush.msra.mxu3 %v34_v0  ;;  %v31_v3 = vld [vmem:[%s258_s1 + $0x60] sm:$0xff]  ;;  %v30_v4 = vld [vmem:[%s258_s1 + $0x58] sm:$0xff] }
   0x3   :  { %39 = vmatpush.msra.mxu0 %v34_v0  ;;  %90 = vmatpush.msra.mxu1 %v34_v0 }
   0x4   :  { %94 = vmatpush.msra.mxu2 %v33_v1  ;;  %95 = vmatpush.msra.mxu3 %v33_v1 }
   0x5   :  { %40 = vmatpush.msra.mxu0 %v33_v1  ;;  %93 = vmatpush.msra.mxu1 %v33_v1 }
   0x6   :  { %97 = vmatpush.msra.mxu2 %v32_v2  ;;  %98 = vmatpush.msra.mxu3 %v32_v2 }
   0x7   :  { %41 = vmatpush.msra.mxu0 %v32_v2  ;;  %96 = vmatpush.msra.mxu1 %v32_v2 }
   0x8   :  { %100 = vmatpush.msra.mxu2 %v31_v3  ;;  %101 = vmatpush.msra.mxu3 %v31_v3 }
   0x9   :  { %8 = vsyncpa [#allocation3], 0  ;;  %v29_v5 = vld [vmem:[%s258_s1 + $0x50] sm:$0xff]  ;;  %42 = vmatpush.msra.mxu0 %v31_v3  ;;  %99 = vmatpush.msra.mxu1 %v31_v3  ;;  %v28_v6 = vld [vmem:[%s258_s1 + $0x48] sm:$0xff]  ;;  %s168_s26 = smov [#allocation2]   ;;  %s170_s30 = smov 8  }
   0xa   :  { %103 = vmatpush.msra.mxu2 %v30_v4  ;;  %104 = vmatpush.msra.mxu3 %v30_v4  ;;  %v27_v7 = vld [vmem:[%s258_s1 + $0x40] sm:$0xff]  ;;  %v26_v8 = vld [vmem:[%s258_s1 + $0x38] sm:$0xff]  ;;  %v25_v9 = vld [vmem:[%s258_s1 + $0x30] sm:$0xff]  ;;  %s76_s27 = sshll.u32 %s168_s26, 4  ;;  %s77_s27 = int_to_ptr.vmem [resolvable:$true] %s76_s27 }
   0xb   :  { %43 = vmatpush.msra.mxu0 %v30_v4  ;;  %102 = vmatpush.msra.mxu1 %v30_v4  ;;  %v24_v10 = vld [vmem:[%s258_s1 + $0x28] sm:$0xff]  ;;  %v23_v11 = vld [vmem:[%s258_s1 + $0x20] sm:$0xff]  ;;  %v22_v12 = vld [vmem:[%s258_s1 + $0x18] sm:$0xff] }
   0xc   :  { %106 = vmatpush.msra.mxu2 %v29_v5  ;;  %107 = vmatpush.msra.mxu3 %v29_v5  ;;  %v21_v13 = vld [vmem:[%s258_s1 + $0x10] sm:$0xff]  ;;  %v20_v14 = vld [vmem:[%s258_s1 + $0x8] sm:$0xff]  ;;  %v19_v15 = vld [vmem:[%s258_s1] sm:$0xff] }
   0xd   :  { %44 = vmatpush.msra.mxu0 %v29_v5  ;;  %105 = vmatpush.msra.mxu1 %v29_v5  ;;  %v17_v16 = vld [vmem:[%s257_s0 + $0x10] sm:$0xff]  ;;  %v18_v17 = vld [vmem:[%s257_s0 + $0x18] sm:$0xff]  ;;  %v15_v18 = vld [vmem:[%s257_s0] sm:$0xff] }
   0xe   :  { %109 = vmatpush.msra.mxu2 %v28_v6  ;;  %110 = vmatpush.msra.mxu3 %v28_v6  ;;  %v16_v19 = vld [vmem:[%s257_s0 + $0x8] sm:$0xff]  ;;  %v141_v20 = vld [vmem:[%s259_s2] ss:$0 sm:$0xff]  ;;  %s78_s0 = sshll.u32 %s260_s3, 4  ;;  %s169_s2 = smov 128   ;;  %s79_s0 = int_to_ptr.hbm [resolvable:$true] %s78_s0 }
   0xf   :  { %45 = vmatpush.msra.mxu0 %v28_v6  ;;  %108 = vmatpush.msra.mxu1 %v28_v6 }
  0x10   :  { %112 = vmatpush.msra.mxu2 %v27_v7  ;;  %113 = vmatpush.msra.mxu3 %v27_v7 }
  0x11   :  { %46 = vmatpush.msra.mxu0 %v27_v7  ;;  %111 = vmatpush.msra.mxu1 %v27_v7 }
  0x12   :  { %115 = vmatpush.msra.mxu2 %v26_v8  ;;  %116 = vmatpush.msra.mxu3 %v26_v8 }
  0x13   :  { %47 = vmatpush.msra.mxu0 %v26_v8  ;;  %114 = vmatpush.msra.mxu1 %v26_v8 }
  0x14   :  { %118 = vmatpush.msra.mxu2 %v25_v9  ;;  %119 = vmatpush.msra.mxu3 %v25_v9 }
  0x15   :  { %48 = vmatpush.msra.mxu0 %v25_v9  ;;  %117 = vmatpush.msra.mxu1 %v25_v9 }
  0x16   :  { %121 = vmatpush.msra.mxu2 %v24_v10  ;;  %122 = vmatpush.msra.mxu3 %v24_v10 }
  0x17   :  { %49 = vmatpush.msra.mxu0 %v24_v10  ;;  %120 = vmatpush.msra.mxu1 %v24_v10 }
  0x18   :  { %124 = vmatpush.msra.mxu2 %v23_v11  ;;  %125 = vmatpush.msra.mxu3 %v23_v11 }
  0x19   :  { %50 = vmatpush.msra.mxu0 %v23_v11  ;;  %123 = vmatpush.msra.mxu1 %v23_v11 }
  0x1a   :  { %127 = vmatpush.msra.mxu2 %v22_v12  ;;  %128 = vmatpush.msra.mxu3 %v22_v12 }
  0x1b   :  { %51 = vmatpush.msra.mxu0 %v22_v12  ;;  %126 = vmatpush.msra.mxu1 %v22_v12 }
  0x1c   :  { %130 = vmatpush.msra.mxu2 %v21_v13  ;;  %131 = vmatpush.msra.mxu3 %v21_v13 }
  0x1d   :  { %52 = vmatpush.msra.mxu0 %v21_v13  ;;  %129 = vmatpush.msra.mxu1 %v21_v13 }
  0x1e   :  { %133 = vmatpush.msra.mxu2 %v20_v14  ;;  %134 = vmatpush.msra.mxu3 %v20_v14 }
  0x1f   :  { %53 = vmatpush.msra.mxu0 %v20_v14  ;;  %132 = vmatpush.msra.mxu1 %v20_v14 }
  0x20   :  { %136 = vmatpush.msra.mxu2 %v19_v15  ;;  %137 = vmatpush.msra.mxu3 %v19_v15 }
  0x21   :  { %61 = vmatmul.f32.vlgmr.msra.gmra.mxu2 %v17_v16  ;;  %64 = vmatmul.f32.vlgmr.msra.gmra.mxu3 %v18_v17 }
  0x22   :  { %54 = vmatpush.msra.mxu0 %v19_v15  ;;  %135 = vmatpush.msra.mxu1 %v19_v15 }
  0x23   :  { %55 = vmatmul.f32.vlgmr.msra.gmra.mxu0 %v15_v18  ;;  %58 = vmatmul.f32.vlgmr.msra.gmra.mxu1 %v16_v19 }
  0xa0   :  { %v56_v21 = vpop.f32.mrf.mxu0  ;;  %v59_v22 = vpop.f32.mrf.mxu1 }
  0xa1   :  { %v57_v23 = vadd.f32 %v141_v20, %v56_v21  ;;  %v60_v24 = vadd.f32 %v141_v20, %v59_v22 }
  0xa3   :  { %68 = vst [vmem:[#allocation2] sm:$0xff] %v57_v23 }
  0xa4   :  { %69 = vst [vmem:[#allocation2 + $0x8] sm:$0xff] %v60_v24  ;;  %v62_v25 = vpop.f32.mrf.mxu2  ;;  %v65_v26 = vpop.f32.mrf.mxu3 }
  0xa5   :  { %v63_v27 = vadd.f32 %v141_v20, %v62_v25  ;;  %v66_v28 = vadd.f32 %v141_v20, %v65_v26 }
  0xa7   :  { %70 = vst [vmem:[#allocation2 + $0x10] sm:$0xff] %v63_v27 }
  0xa8   :  { %71 = vst [vmem:[#allocation2 + $0x18] sm:$0xff] %v66_v28 }
  0xa9   :  { %84 = dma.vmem_to_hbm [thread:$0]  %s77_s27, 512, %s79_s0, [#allocation3], %s169_s2, %s169_s2, %s170_s30  }
  0xaa   :  { %166 = dma.done.wait [#allocation3], 512  }
  0xab   :  { %167 = vsyncadd [#allocation3], 4294966784 }
  0xac   :  { %89 = vsyncpa [#allocation3], 1 }

</bundles_post_ra>
